<compile_context>
chip_gen: v6e
topology: v6e:2x2x1
jax: 0.10.0
libtpu: 0.0.40
codegen_flags: <defaults>
</compile_context>

<pallas_src>
import jax
import jax.numpy as jnp
from jax import lax
from jax.experimental import pallas as pl
from jax.experimental.pallas import tpu as pltpu

POOLING_SUM = 0
POOLING_MEAN = 1

_LANES = 128
_ROWS_PER_BLOCK = 128  # output bags per grid step (MXU-friendly on all gens)


def _round_up(x, m):
    return ((x + m - 1) // m) * m


def _merged_embeddingbag_kernel(bag_ids_ref, wvec_ref, idx_ref, w_ref, out_ref):
    """One grid step computes `bm` bags for ALL tables (packed along lanes).

    bag_ids_ref : VMEM (1, J)  int32  global bag id per merged index (-1 = pad)
    wvec_ref    : VMEM (1, J)  f32    per-index weight (1, 1/count, 0 for pad)
    idx_ref     : VMEM (J, 1)  int32  merged (table-base-shifted) row indices
    w_ref       : VMEM (N, TD) dtype  packed weights, table t in lanes [t*D,(t+1)*D)
    out_ref     : VMEM (BM,TD) dtype  output tile, row = bag
    """
    bm = out_ref.shape[0]
    j_pad = idx_ref.shape[0]
    n_pad = w_ref.shape[0]
    blk = pl.program_id(0)

    # Row gather via one-hot matmul on the MXU:  G[j, :] = W_packed[idx[j], :]
    col_iota = lax.broadcasted_iota(jnp.int32, (j_pad, n_pad), 1)
    onehot = (idx_ref[...] == col_iota).astype(w_ref.dtype)            # (J, N)
    gathered = jnp.dot(onehot, w_ref[...],
                       preferred_element_type=jnp.float32)             # (J, TD) f32

    # Bag-membership matrix with the mean-pooling 1/count folded in.
    row_ids = lax.broadcasted_iota(jnp.int32, (bm, j_pad), 0) + blk * bm
    member = (row_ids == bag_ids_ref[...]).astype(jnp.float32)         # (BM, J)
    a = member * wvec_ref[...]                                         # (BM, J) f32

    out = jnp.dot(a, gathered, preferred_element_type=jnp.float32)     # (BM, TD)
    out_ref[...] = out.astype(out_ref.dtype)


def _merged_embeddingbag_forward(w_packed, bag_ids_row, wvec_row, idx_col,
                                 batch_pad, out_dtype, bm=_ROWS_PER_BLOCK):
    n_pad, td_pad = w_packed.shape
    j_pad = idx_col.shape[0]
    grid = (batch_pad // bm,)
    return pl.pallas_call(
        _merged_embeddingbag_kernel,
        out_shape=jax.ShapeDtypeStruct((batch_pad, td_pad), out_dtype),
        grid=grid,
        in_specs=[
            pl.BlockSpec((1, j_pad), lambda i: (0, 0)),
            pl.BlockSpec((1, j_pad), lambda i: (0, 0)),
            pl.BlockSpec((j_pad, 1), lambda i: (0, 0)),
            # Whole packed table resident in VMEM (tables are small here).
            pl.BlockSpec((n_pad, td_pad), lambda i: (0, 0)),
        ],
        out_specs=pl.BlockSpec((bm, td_pad), lambda i: (i, 0)),
        compiler_params=pltpu.CompilerParams(
            dimension_semantics=("parallel",)),  # independent bag blocks
    )(bag_ids_row, wvec_row, idx_col, w_packed)


class MergedEmbeddingBagPallas:
    """JAX/Pallas analogue of ipex MergedEmbeddingBag (forward only, dense)."""

    def __init__(self, weights, pooling_mode="sum", include_last_offset=False):
        assert len(weights) > 0, "MergedEmbeddingBag at least have 1 table"
        dim = int(weights[0].shape[1])
        assert all(int(w.shape[1]) == dim for w in weights)
        dtype = weights[0].dtype
        assert all(w.dtype == dtype for w in weights)
        assert pooling_mode in ("sum", "mean")

        self.n_tables = len(weights)
        self.embedding_dim = dim
        self.dtype = dtype
        self.pooling_mode = POOLING_SUM if pooling_mode == "sum" else POOLING_MEAN
        self.include_last_offset = include_last_offset

        self.num_embeddings = [int(w.shape[0]) for w in weights]
        bases = [0]
        for n in self.num_embeddings:
            bases.append(bases[-1] + n)
        self.bases = bases
        n_total = bases[-1]
        self.n_pad = _round_up(max(n_total, _LANES), _LANES)

        td = self.n_tables * dim
        self.td_pad = _round_up(max(td, _LANES), _LANES)

        # Lane-packed merged table: table t -> rows [bases[t], bases[t]+n_t),
        # lanes [t*D, (t+1)*D); zeros elsewhere. Gives lane-dense output rows.
        w_packed = jnp.zeros((self.n_pad, self.td_pad), dtype=dtype)
        for t, w in enumerate(weights):
            w_packed = w_packed.at[
                bases[t]:bases[t] + self.num_embeddings[t],
                t * dim:(t + 1) * dim].set(jnp.asarray(w, dtype=dtype))
        self.w_packed = w_packed

    def __call__(self, indices_list, offsets_list):
        T = self.n_tables
        D = self.embedding_dim
        assert len(indices_list) == T and len(offsets_list) == T

        idx_parts, bag_parts, w_parts, batch_sizes = [], [], [], []
        for t in range(T):
            idx = jnp.asarray(indices_list[t], dtype=jnp.int32)
            off = jnp.asarray(offsets_list[t], dtype=jnp.int32)
            n_ind = int(idx.shape[0])
            if self.include_last_offset:
                batch_t = int(off.shape[0]) - 1
                off_full = off
            else:
                batch_t = int(off.shape[0])
                off_full = jnp.concatenate(
                    [off, jnp.array([n_ind], dtype=jnp.int32)])
            batch_sizes.append(batch_t)

            # CSR offsets -> per-index bag id / weight (COO form).
            pos = jnp.arange(n_ind, dtype=jnp.int32)
            bag = jnp.searchsorted(off_full[1:], pos,
                                   side="right").astype(jnp.int32)
            valid = pos < off_full[batch_t]   # indices past the last offset -> drop
            bag_c = jnp.clip(bag, 0, batch_t - 1)
            if self.pooling_mode == POOLING_MEAN:
                cnt = (off_full[bag_c + 1] - off_full[bag_c]).astype(jnp.float32)
                wv = jnp.where(valid, 1.0 / jnp.maximum(cnt, 1.0), 0.0)
            else:
                wv = jnp.where(valid, 1.0, 0.0)

            idx_parts.append(idx + self.bases[t])
            bag_parts.append(jnp.where(valid, bag, -1))
            w_parts.append(wv.astype(jnp.float32))

        j_total = sum(int(p.shape[0]) for p in idx_parts)
        j_pad = _round_up(max(j_total, _LANES), _LANES)
        pad = j_pad - j_total
        idx_m = jnp.concatenate(idx_parts + [jnp.zeros((pad,), jnp.int32)])
        bag_m = jnp.concatenate(bag_parts + [jnp.full((pad,), -1, jnp.int32)])
        w_m = jnp.concatenate(w_parts + [jnp.zeros((pad,), jnp.float32)])

        batch_max = max(batch_sizes)
        batch_pad = _round_up(max(batch_max, _ROWS_PER_BLOCK), _ROWS_PER_BLOCK)

        out = _merged_embeddingbag_forward(
            self.w_packed,
            bag_m.reshape(1, j_pad),
            w_m.reshape(1, j_pad),
            idx_m.reshape(j_pad, 1),
            batch_pad, self.dtype)

        # Un-pack: table t's result lives at lanes [t*D, (t+1)*D).
        return [out[:batch_sizes[t], t * D:(t + 1) * D] for t in range(T)]


def _reference_embedding_bag(weight, indices, offsets, pooling_mode,
                             include_last_offset):
    """Pure-JAX reference (gather + segment reduce) for verification."""
    n_ind = int(indices.shape[0])
    if include_last_offset:
        batch = int(offsets.shape[0]) - 1
        off_full = offsets
    else:
        batch = int(offsets.shape[0])
        off_full = jnp.concatenate([offsets, jnp.array([n_ind], jnp.int32)])
    outs = []
    for b in range(batch):
        s = int(off_full[b])
        e = int(off_full[b + 1])
        if e > s:
            rows = weight[indices[s:e]]
            acc = rows.astype(jnp.float32).sum(axis=0)
            if pooling_mode == POOLING_MEAN:
                acc = acc / float(e - s)
        else:
            acc = jnp.zeros((weight.shape[1],), jnp.float32)
        outs.append(acc.astype(weight.dtype))
    return jnp.stack(outs, axis=0)


if __name__ == "__main__":
    key = jax.random.PRNGKey(0)

    # 3 merged tables, same embedding_dim / pooling / dtype (module contract).
    num_embeddings_list = [50, 30, 40]
    embedding_dim = 32
    batch = 8

    keys = jax.random.split(key, 3 * len(num_embeddings_list))
    weights, indices_list, offsets_list = [], [], []
    for t, ne in enumerate(num_embeddings_list):
        kw, ki, ko = keys[3 * t], keys[3 * t + 1], keys[3 * t + 2]
        w = jax.random.normal(kw, (ne, embedding_dim), dtype=jnp.float32) * 0.05
        n_ind = 20 + 4 * t
        idx = jax.random.randint(ki, (n_ind,), 0, ne, dtype=jnp.int32)
        # Monotonic offsets of length `batch`, first entry 0.
        cuts = jnp.sort(jax.random.randint(ko, (batch - 1,), 0, n_ind + 1,
                                           dtype=jnp.int32))
        off = jnp.concatenate([jnp.zeros((1,), jnp.int32), cuts])
        weights.append(w)
        indices_list.append(idx)
        offsets_list.append(off)

    # Exercise sum / mean and both include_last_offset settings.
    configs = [("sum", False), ("mean", False), ("sum", True)]
    for pooling, include_last in configs:
        if include_last:
            offs = [jnp.concatenate(
                        [o, jnp.array([int(i.shape[0])], jnp.int32)])
                    for o, i in zip(offsets_list, indices_list)]
        else:
            offs = offsets_list

        merged = MergedEmbeddingBagPallas(
            weights, pooling_mode=pooling, include_last_offset=include_last)
        outputs = merged(indices_list, offs)
        outputs = [jax.block_until_ready(o) for o in outputs]

        pm = POOLING_SUM if pooling == "sum" else POOLING_MEAN
        for t in range(len(weights)):
            ref = _reference_embedding_bag(
                weights[t], indices_list[t], offs[t], pm, include_last)
            assert outputs[t].shape == (batch, embedding_dim)
            assert jnp.allclose(outputs[t], ref, atol=1e-5, rtol=1e-5), \
                f"table {t} mismatch (pooling={pooling}, last={include_last})"

    print("KERNEL_OK")
</pallas_src>

<mosaic_0001>
module attributes {stable_mosaic.version = 11 : i64} {
  func.func @_merged_embeddingbag_kernel(%arg0: i32, %arg1: memref<1x128xi32, #tpu.memory_space<vmem>>, %arg2: memref<1x128xf32, #tpu.memory_space<vmem>>, %arg3: memref<128x1xi32, #tpu.memory_space<vmem>>, %arg4: memref<128x128xf32, #tpu.memory_space<vmem>>, %arg5: memref<128x128xf32, #tpu.memory_space<vmem>>) attributes {dimension_semantics = [#tpu.dimension_semantics<parallel>], iteration_bounds = array<i64: 1>, scalar_prefetch = 0 : i64, scratch_operands = 0 : i64, tpu.core_type = #tpu.core_type<tc>, window_params = [{pipeline_mode = #tpu.pipeline_mode<synchronous>, transform_indices = @transform_0, window_bounds = array<i64: 1, 128>}, {pipeline_mode = #tpu.pipeline_mode<synchronous>, transform_indices = @transform_1, window_bounds = array<i64: 1, 128>}, {pipeline_mode = #tpu.pipeline_mode<synchronous>, transform_indices = @transform_2, window_bounds = array<i64: 128, 1>}, {pipeline_mode = #tpu.pipeline_mode<synchronous>, transform_indices = @transform_3, window_bounds = array<i64: 128, 128>}, {transform_indices = @transform_4, window_bounds = array<i64: 128, 128>}]} {
    %0 = tpu.iota {dimensions = array<i32: 1>} : vector<128x128xi32>
    %c0 = arith.constant 0 : index
    %c0_0 = arith.constant 0 : index
    %1 = vector.load %arg3[%c0, %c0_0] : memref<128x1xi32, #tpu.memory_space<vmem>>, vector<128x1xi32>
    %2 = vector.broadcast %1 : vector<128x1xi32> to vector<128x128xi32>
    %3 = arith.cmpi eq, %2, %0 : vector<128x128xi32>
    %4 = arith.extui %3 : vector<128x128xi1> to vector<128x128xi32>
    %5 = arith.sitofp %4 : vector<128x128xi32> to vector<128x128xf32>
    %c0_1 = arith.constant 0 : index
    %c0_2 = arith.constant 0 : index
    %6 = vector.load %arg4[%c0_1, %c0_2] : memref<128x128xf32, #tpu.memory_space<vmem>>, vector<128x128xf32>
    %cst = arith.constant dense<0.000000e+00> : vector<128x128xf32>
    %7 = tpu.matmul %5, %6, %cst {dimension_numbers = #tpu.dot_dimension_numbers<[1], [0], [0], [1], [0, 0, 1, 1], [], []>} : vector<128x128xf32>, vector<128x128xf32>, vector<128x128xf32> -> vector<128x128xf32>
    %8 = tpu.iota {dimensions = array<i32: 0>} : vector<128x128xi32>
    %c128_i32 = arith.constant 128 : i32
    %9 = arith.muli %arg0, %c128_i32 : i32
    %10 = vector.broadcast %9 : i32 to vector<128x128xi32>
    %11 = arith.addi %8, %10 : vector<128x128xi32>
    %c0_3 = arith.constant 0 : index
    %c0_4 = arith.constant 0 : index
    %12 = vector.load %arg1[%c0_3, %c0_4] : memref<1x128xi32, #tpu.memory_space<vmem>>, vector<1x128xi32>
    %13 = vector.broadcast %12 : vector<1x128xi32> to vector<128x128xi32>
    %14 = arith.cmpi eq, %11, %13 : vector<128x128xi32>
    %15 = arith.extui %14 : vector<128x128xi1> to vector<128x128xi32>
    %16 = arith.sitofp %15 : vector<128x128xi32> to vector<128x128xf32>
    %c0_5 = arith.constant 0 : index
    %c0_6 = arith.constant 0 : index
    %17 = vector.load %arg2[%c0_5, %c0_6] : memref<1x128xf32, #tpu.memory_space<vmem>>, vector<1x128xf32>
    %18 = vector.broadcast %17 : vector<1x128xf32> to vector<128x128xf32>
    %19 = arith.mulf %16, %18 : vector<128x128xf32>
    %cst_7 = arith.constant dense<0.000000e+00> : vector<128x128xf32>
    %20 = tpu.matmul %19, %7, %cst_7 {dimension_numbers = #tpu.dot_dimension_numbers<[1], [0], [0], [1], [0, 0, 1, 1], [], []>} : vector<128x128xf32>, vector<128x128xf32>, vector<128x128xf32> -> vector<128x128xf32>
    %c0_8 = arith.constant 0 : index
    %c0_9 = arith.constant 0 : index
    %21 = vector.load %arg5[%c0_8, %c0_9] : memref<128x128xf32, #tpu.memory_space<vmem>>, vector<128x128xf32>
    tpu.vector_store %arg5[%c0_8, %c0_9], %20 {strides = array<i32>} : memref<128x128xf32, #tpu.memory_space<vmem>>, vector<128x128xf32>,
    return
  }
  func.func @transform_0(%arg0: i32) -> (i32, i32) {
    %c0_i32 = arith.constant 0 : i32
    %c0_i32_0 = arith.constant 0 : i32
    %c0_i32_1 = arith.constant 0 : i32
    return %c0_i32, %c0_i32_0 : i32, i32
  }
  func.func @transform_1(%arg0: i32) -> (i32, i32) {
    %c0_i32 = arith.constant 0 : i32
    %c0_i32_0 = arith.constant 0 : i32
    %c0_i32_1 = arith.constant 0 : i32
    return %c0_i32, %c0_i32_0 : i32, i32
  }
  func.func @transform_2(%arg0: i32) -> (i32, i32) {
    %c0_i32 = arith.constant 0 : i32
    %c0_i32_0 = arith.constant 0 : i32
    %c0_i32_1 = arith.constant 0 : i32
    return %c0_i32, %c0_i32_0 : i32, i32
  }
  func.func @transform_3(%arg0: i32) -> (i32, i32) {
    %c0_i32 = arith.constant 0 : i32
    %c0_i32_0 = arith.constant 0 : i32
    %c0_i32_1 = arith.constant 0 : i32
    return %c0_i32, %c0_i32_0 : i32, i32
  }
  func.func @transform_4(%arg0: i32) -> (i32, i32) {
    %c0_i32 = arith.constant 0 : i32
    %c0_i32_0 = arith.constant 0 : i32
    return %arg0, %c0_i32 : i32, i32
  }
}

</mosaic_0001>

<bundles_post_ra>
// kernel: tpu_custom_call.1
= control target key start
LH: loop header
LB: loop body
LE: loop exit
PB: predicated region body
PF: predicated region fallthrough
CT: control target
= control target key end

     0   :  { %v837_v2 = vmov 0   ;;  %s1033_s0 = inlined_call_operand.vmem [shape: s32[1,128], index: 0, kind: input, shape index: {}]   ;;  %s1034_s1 = inlined_call_operand.vmem [shape: f32[1,128], index: 1, kind: input, shape index: {}]   ;;  %s1035_s2 = inlined_call_operand.vmem [shape: s32[128,1], index: 2, kind: input, shape index: {}]   ;;  %s1036_s3 = inlined_call_operand.vmem [shape: f32[128,128], index: 3, kind: input, shape index: {}]   ;;  %s1037_s4 = inlined_call_operand.hbm [shape: f32[128,128], index: 4, kind: output, shape index: {}]  }
   0x1   :  { %v22_v0 = vld [vmem:[%s1035_s2 + $0x10] sm:$0xff]  ;;  %v20_v1 = vld [vmem:[%s1035_s2] sm:$0xff]  ;;  %814 = vset.pattern.permute.xlu1 %v837_v2  ;;  %813 = vset.pattern.permute.xlu0 %v837_v2  ;;  %v23_v3 = vld [vmem:[%s1035_s2 + $0x18] sm:$0xff] }
   0x2   :  { %43 = vperm.xlu1 %814, %v22_v0   ;;  %37 = vperm.xlu0 %813, %v20_v1   ;;  %v21_v4 = vld [vmem:[%s1035_s2 + $0x8] sm:$0xff]  ;;  %v147_v5 = vld [vmem:[%s1036_s3 + $0x78] sm:$0xff]  ;;  %v146_v6 = vld [vmem:[%s1036_s3 + $0x70] sm:$0xff] }
   0x3   :  { %v25_v7 = vld [vmem:[%s1035_s2 + $0x28] sm:$0xff]  ;;  %v24_v8 = vld [vmem:[%s1035_s2 + $0x20] sm:$0xff]  ;;  %695 = vmatprep.subr.mxu0 %v147_v5 }
   0x4   :  { %696 = vmatpush3.msra.mxu0 %v147_v5  ;;  %v145_v9 = vld [vmem:[%s1036_s3 + $0x68] sm:$0xff] }
   0x5   :  { %697 = vmatprep.subr.mxu0 %v146_v6 }
   0x6   :  { %46 = vperm.xlu1 %814, %v23_v3   ;;  %40 = vperm.xlu0 %813, %v21_v4  }
   0xa   :  { %52 = vperm.xlu1 %814, %v25_v7   ;;  %49 = vperm.xlu0 %813, %v24_v8  }
   0xb   :  { %9 = vsyncpa [#allocation3], 0  ;;  %v27_v10 = vld [vmem:[%s1035_s2 + $0x38] sm:$0xff]  ;;  %v26_v11 = vld [vmem:[%s1035_s2 + $0x30] sm:$0xff]  ;;  %698 = vmatpush3.msra.mxu0 %v146_v6  ;;  %v18_v33 = vlaneseq  ;;  %v838_v37 = vmov 1.0   ;;  %v839_v55 = vmov 0.0  }
   0xc   :  { %699 = vmatprep.subr.mxu0 %v145_v9  ;;  %v144_v12 = vld [vmem:[%s1036_s3 + $0x60] sm:$0xff]  ;;  %v143_v13 = vld [vmem:[%s1036_s3 + $0x58] sm:$0xff]  ;;  %v29_v14 = vld [vmem:[%s1035_s2 + $0x48] sm:$0xff] }
   0xd   :  { %700 = vmatpush3.msra.mxu0 %v145_v9  ;;  %v28_v15 = vld [vmem:[%s1035_s2 + $0x40] sm:$0xff]  ;;  %v142_v16 = vld [vmem:[%s1036_s3 + $0x50] sm:$0xff]  ;;  %v31_v17 = vld [vmem:[%s1035_s2 + $0x58] sm:$0xff]  ;;  %v19_v34 = vand.u32 127, %v18_v33  ;;  %v294_v52 = vshrl.u32 %v18_v33, 7 }
   0xe   :  { %58 = vperm.xlu1 %814, %v27_v10   ;;  %55 = vperm.xlu0 %813, %v26_v11   ;;  %v30_v18 = vld [vmem:[%s1035_s2 + $0x50] sm:$0xff]  ;;  %v141_v19 = vld [vmem:[%s1036_s3 + $0x48] sm:$0xff]  ;;  %v140_v20 = vld [vmem:[%s1036_s3 + $0x40] sm:$0xff] }
   0xf   :  { %701 = vmatprep.subr.mxu0 %v144_v12  ;;  %v33_v21 = vld [vmem:[%s1035_s2 + $0x68] sm:$0xff]  ;;  %v32_v22 = vld [vmem:[%s1035_s2 + $0x60] sm:$0xff]  ;;  %v139_v23 = vld [vmem:[%s1036_s3 + $0x38] sm:$0xff]  ;;  %v295_v54 = vadd.s32 8, %v294_v52  ;;  %v296_v60 = vadd.s32 16, %v294_v52  ;;  %v297_v62 = vadd.s32 24, %v294_v52 }
  0x10   :  { %702 = vmatpush3.msra.mxu0 %v144_v12  ;;  %v35_v24 = vld [vmem:[%s1035_s2 + $0x78] sm:$0xff]  ;;  %v34_v25 = vld [vmem:[%s1035_s2 + $0x70] sm:$0xff]  ;;  %v137_v27 = vld [vmem:[%s1036_s3 + $0x28] sm:$0xff]  ;;  %v298_v2 = vadd.s32 32, %v294_v52  ;;  %v299_v4 = vadd.s32 40, %v294_v52  ;;  %v300_v8 = vadd.s32 48, %v294_v52 }
  0x11   :  { %703 = vmatprep.subr.mxu0 %v143_v13  ;;  %v138_v26 = vld [vmem:[%s1036_s3 + $0x30] sm:$0xff]  ;;  %v136_v28 = vld [vmem:[%s1036_s3 + $0x20] sm:$0xff]  ;;  %v135_v29 = vld [vmem:[%s1036_s3 + $0x18] sm:$0xff]  ;;  %v301_v10 = vadd.s32 56, %v294_v52 }
  0x12   :  { %64 = vperm.xlu1 %814, %v29_v14   ;;  %61 = vperm.xlu0 %813, %v28_v15   ;;  %v134_v30 = vld [vmem:[%s1036_s3 + $0x10] sm:$0xff]  ;;  %v133_v31 = vld [vmem:[%s1036_s3 + $0x8] sm:$0xff]  ;;  %v132_v32 = vld [vmem:[%s1036_s3] sm:$0xff]  ;;  %v302_v14 = vadd.s32 64, %v294_v52 }
  0x13   :  { %704 = vmatpush3.msra.mxu0 %v143_v13  ;;  %v967_v53 = vld [vmem:[%s1033_s0] ss:$0 sm:$0xff]  ;;  %s840_s0 = smov [#allocation2]  }
  0x14   :  { %705 = vmatprep.subr.mxu0 %v142_v16  ;;  %v630_v57 = vld [vmem:[%s1034_s1] ss:$0 sm:$0xff]  ;;  %s570_s1 = sshll.u32 %s840_s0, 4  ;;  %s571_s1 = int_to_ptr.vmem [resolvable:$true] %s570_s1 }
  0x15   :  { %706 = vmatpush3.msra.mxu0 %v142_v16  ;;  %v303_v16 = vadd.s32 72, %v294_v52  ;;  %s815_s29 = scalar_lea.vmem %s571_s1, 2048  ;;  %p820_p1 = scmp.lt.s32.totalorder %s571_s1, %s571_s1 }
  0x16   :  { %70 = vperm.xlu1 %814, %v31_v17   ;;  %67 = vperm.xlu0 %813, %v30_v18   ;;  %p816_p0 = scmp.ne.s32.totalorder %s571_s1, %s815_s29  ;;  %p821_p2 = scmp.lt.s32.totalorder %s815_s29, %s815_s29 }
  0x17   :  { %707 = vmatprep.subr.mxu0 %v141_v19 }
  0x18   :  { %708 = vmatpush3.msra.mxu0 %v141_v19  ;;  %p822_p3 = por %p821_p2, %p820_p1 }
  0x19   :  { %709 = vmatprep.subr.mxu0 %v140_v20 }
  0x1a   :  { %76 = vperm.xlu1 %814, %v33_v21   ;;  %73 = vperm.xlu0 %813, %v32_v22   ;;  %v305_v22 = vadd.s32 88, %v294_v52  ;;  %p823_p4 = pnand %p822_p3, %p816_p0 }
  0x1b   :  { %710 = vmatpush3.msra.mxu0 %v140_v20  ;;  %v304_v20 = vadd.s32 80, %v294_v52 }
  0x1c   :  { %711 = vmatprep.subr.mxu0 %v139_v23 }
  0x1d   :  { %712 = vmatpush3.msra.mxu0 %v139_v23 }
  0x1e   :  { %82 = vperm.xlu1 %814, %v35_v24   ;;  %79 = vperm.xlu0 %813, %v34_v25  }
  0x1f   :  { %713 = vmatprep.subr.mxu0 %v138_v26 }
  0x20   :  { %714 = vmatpush3.msra.mxu0 %v138_v26  ;;  %v306_v26 = vadd.s32 96, %v294_v52 }
  0x21   :  { %715 = vmatprep.subr.mxu0 %v137_v27 }
  0x22   :  { %716 = vmatpush3.msra.mxu0 %v137_v27 }
  0x23   :  { %717 = vmatprep.subr.mxu0 %v136_v28 }
  0x24   :  { %718 = vmatpush3.msra.mxu0 %v136_v28  ;;  %v307_v28 = vadd.s32 104, %v294_v52 }
  0x25   :  { %719 = vmatprep.subr.mxu0 %v135_v29 }
  0x26   :  { %720 = vmatpush3.msra.mxu0 %v135_v29 }
  0x27   :  { %721 = vmatprep.subr.mxu0 %v134_v30 }
  0x28   :  { %722 = vmatpush3.msra.mxu0 %v134_v30 }
  0x29   :  { %723 = vmatprep.subr.mxu0 %v133_v31 }
  0x2a   :  { %724 = vmatpush3.msra.mxu0 %v133_v31 }
  0x2b   :  { %725 = vmatprep.subr.mxu0 %v132_v32 }
  0x2c   :  { %726 = vmatpush3.msra.mxu0 %v132_v32  ;;  %v308_v32 = vadd.s32 112, %v294_v52 }
  0x7d   :  { %v44_v35 = vpop.permute.xlu1 %43  ;;  %v38_v36 = vpop.permute.xlu0 %37 }
  0x7e   :  { %vm84_vm0 = vcmp.eq.s32.totalorder %v38_v36, %v19_v34  ;;  %vm86_vm1 = vcmp.eq.s32.totalorder %v44_v35, %v19_v34 }
  0x7f   :  { %727 = vmatprep.mubr.msk.f32.mxu0 %vm84_vm0, %v838_v37  ;;  %vm333_vm0 = vcmp.eq.s32.totalorder %v294_v52, %v967_v53 }
  0x80   :  { %v614_v56 = vsel %vm333_vm0, 1.0, %v839_v55 }
  0x81   :  { %v47_v38 = vpop.permute.xlu1 %46  ;;  %v41_v39 = vpop.permute.xlu0 %40  ;;  %v388_v58 = vmul.f32 %v630_v57, %v614_v56 }
  0x82   :  { %vm85_vm2 = vcmp.eq.s32.totalorder %v41_v39, %v19_v34  ;;  %vm87_vm3 = vcmp.eq.s32.totalorder %v47_v38, %v19_v34 }
  0x83   :  { %728 = vmatmul.mubr.msk.f32.vlgmr.msra.gmra.mxu0 %vm85_vm2, %v838_v37  ;;  %783 = vmatprep.mubr.f32.mxu1 %v388_v58  ;;  %vm335_vm2 = vcmp.eq.s32.totalorder %v296_v60, %v967_v53 }
  0x84   :  { %730 = vmatprep.mubr.msk.f32.mxu0 %vm86_vm1, %v838_v37  ;;  %vm334_vm1 = vcmp.eq.s32.totalorder %v295_v54, %v967_v53  ;;  %v616_v63 = vsel %vm335_vm2, 1.0, %v839_v55 }
  0x85   :  { %v53_v40 = vpop.permute.xlu1 %52  ;;  %v50_v41 = vpop.permute.xlu0 %49  ;;  %v615_v59 = vsel %vm334_vm1, 1.0, %v839_v55  ;;  %v978_v0 = vmul.f32 %v630_v57, %v616_v63 }
  0x86   :  { %vm88_vm4 = vcmp.eq.s32.totalorder %v50_v41, %v19_v34  ;;  %vm89_vm5 = vcmp.eq.s32.totalorder %v53_v40, %v19_v34  ;;  %v974_v61 = vmul.f32 %v630_v57, %v615_v59 }
  0x87   :  { %731 = vmatmul.mubr.msk.f32.gmra.mxu0 %vm87_vm3, %v838_v37  ;;  %vm336_vm3 = vcmp.eq.s32.totalorder %v297_v62, %v967_v53 }
  0x88   :  { %733 = vmatprep.mubr.msk.f32.mxu0 %vm88_vm4, %v838_v37  ;;  %v617_v1 = vsel %vm336_vm3, 1.0, %v839_v55  ;;  %vm337_vm4 = vcmp.eq.s32.totalorder %v298_v2, %v967_v53 }
  0x89   :  { %v59_v42 = vpop.permute.xlu1 %58  ;;  %v56_v43 = vpop.permute.xlu0 %55  ;;  %v980_v3 = vmul.f32 %v630_v57, %v617_v1  ;;  %v618_v5 = vsel %vm337_vm4, 1.0, %v839_v55 }
  0x8a   :  { %vm90_vm6 = vcmp.eq.s32.totalorder %v56_v43, %v19_v34  ;;  %vm91_vm7 = vcmp.eq.s32.totalorder %v59_v42, %v19_v34  ;;  %v984_v6 = vmul.f32 %v630_v57, %v618_v5 }
  0x8b   :  { %734 = vmatmul.mubr.msk.f32.gmra.mxu0 %vm89_vm5, %v838_v37  ;;  %vm338_vm5 = vcmp.eq.s32.totalorder %v299_v4, %v967_v53 }
  0x8c   :  { %736 = vmatprep.mubr.msk.f32.mxu0 %vm90_vm6, %v838_v37  ;;  %v619_v7 = vsel %vm338_vm5, 1.0, %v839_v55  ;;  %vm339_vm6 = vcmp.eq.s32.totalorder %v300_v8, %v967_v53 }
  0x8d   :  { %v65_v44 = vpop.permute.xlu1 %64  ;;  %v62_v45 = vpop.permute.xlu0 %61  ;;  %v986_v9 = vmul.f32 %v630_v57, %v619_v7  ;;  %v620_v11 = vsel %vm339_vm6, 1.0, %v839_v55 }
  0x8e   :  { %vm92_vm8 = vcmp.eq.s32.totalorder %v62_v45, %v19_v34  ;;  %vm93_vm9 = vcmp.eq.s32.totalorder %v65_v44, %v19_v34  ;;  %v990_v12 = vmul.f32 %v630_v57, %v620_v11 }
  0x8f   :  { %737 = vmatmul.mubr.msk.f32.gmra.mxu0 %vm91_vm7, %v838_v37  ;;  %vm340_vm7 = vcmp.eq.s32.totalorder %v301_v10, %v967_v53 }
  0x90   :  { %739 = vmatprep.mubr.msk.f32.mxu0 %vm92_vm8, %v838_v37  ;;  %v621_v13 = vsel %vm340_vm7, 1.0, %v839_v55  ;;  %vm341_vm8 = vcmp.eq.s32.totalorder %v302_v14, %v967_v53 }
  0x91   :  { %v71_v46 = vpop.permute.xlu1 %70  ;;  %v68_v47 = vpop.permute.xlu0 %67  ;;  %v992_v15 = vmul.f32 %v630_v57, %v621_v13  ;;  %v622_v17 = vsel %vm341_vm8, 1.0, %v839_v55 }
  0x92   :  { %vm94_vm10 = vcmp.eq.s32.totalorder %v68_v47, %v19_v34  ;;  %vm95_vm11 = vcmp.eq.s32.totalorder %v71_v46, %v19_v34  ;;  %v996_v18 = vmul.f32 %v630_v57, %v622_v17 }
  0x93   :  { %740 = vmatmul.mubr.msk.f32.gmra.mxu0 %vm93_vm9, %v838_v37  ;;  %vm342_vm9 = vcmp.eq.s32.totalorder %v303_v16, %v967_v53 }
  0x94   :  { %742 = vmatprep.mubr.msk.f32.mxu0 %vm94_vm10, %v838_v37  ;;  %v623_v19 = vsel %vm342_vm9, 1.0, %v839_v55  ;;  %vm343_vm10 = vcmp.eq.s32.totalorder %v304_v20, %v967_v53 }
  0x95   :  { %v77_v48 = vpop.permute.xlu1 %76  ;;  %v74_v49 = vpop.permute.xlu0 %73  ;;  %v998_v21 = vmul.f32 %v630_v57, %v623_v19  ;;  %v624_v23 = vsel %vm343_vm10, 1.0, %v839_v55 }
  0x96   :  { %vm96_vm12 = vcmp.eq.s32.totalorder %v74_v49, %v19_v34  ;;  %vm97_vm13 = vcmp.eq.s32.totalorder %v77_v48, %v19_v34  ;;  %v1002_v24 = vmul.f32 %v630_v57, %v624_v23 }
  0x97   :  { %743 = vmatmul.mubr.msk.f32.gmra.mxu0 %vm95_vm11, %v838_v37  ;;  %vm344_vm11 = vcmp.eq.s32.totalorder %v305_v22, %v967_v53 }
  0x98   :  { %745 = vmatprep.mubr.msk.f32.mxu0 %vm96_vm12, %v838_v37  ;;  %v625_v25 = vsel %vm344_vm11, 1.0, %v839_v55  ;;  %vm345_vm12 = vcmp.eq.s32.totalorder %v306_v26, %v967_v53 }
  0x99   :  { %v80_v50 = vpop.permute.xlu0 %79  ;;  %v83_v51 = vpop.permute.xlu1 %82  ;;  %v1004_v27 = vmul.f32 %v630_v57, %v625_v25  ;;  %v626_v29 = vsel %vm345_vm12, 1.0, %v839_v55 }
  0x9a   :  { %vm98_vm14 = vcmp.eq.s32.totalorder %v80_v50, %v19_v34  ;;  %vm99_vm15 = vcmp.eq.s32.totalorder %v83_v51, %v19_v34  ;;  %v1008_v30 = vmul.f32 %v630_v57, %v626_v29  ;;  %v309_v34 = vadd.s32 120, %v294_v52 }
  0x9b   :  { %746 = vmatmul.mubr.msk.f32.gmra.mxu0 %vm97_vm13, %v838_v37  ;;  %vm346_vm13 = vcmp.eq.s32.totalorder %v307_v28, %v967_v53 }
  0x9c   :  { %748 = vmatprep.mubr.msk.f32.mxu0 %vm98_vm14, %v838_v37  ;;  %v627_v31 = vsel %vm346_vm13, 1.0, %v839_v55  ;;  %vm347_vm14 = vcmp.eq.s32.totalorder %v308_v32, %v967_v53 }
  0x9d   :  { %v1010_v33 = vmul.f32 %v630_v57, %v627_v31  ;;  %v628_v35 = vsel %vm347_vm14, 1.0, %v839_v55 }
  0x9e   :  { %v1014_v36 = vmul.f32 %v630_v57, %v628_v35 }
  0x9f   :  { %749 = vmatmul.mubr.msk.f32.gmra.mxu0 %vm99_vm15, %v838_v37  ;;  %vm348_vm15 = vcmp.eq.s32.totalorder %v309_v34, %v967_v53 }
  0xa0   :  { %v629_v37 = vsel %vm348_vm15, 1.0, %v839_v55 }
  0xa1   :  { %v403_v38 = vmul.f32 %v630_v57, %v629_v37 }
 0x143   :  { %v729_v39 = vpop.f32.mrf.mxu0 }
 0x145   :  { %v214_v40 = vpop.f32.mrf.mxu0 }
 0x147   :  { %v732_v41 = vpop.f32.mrf.mxu0 }
 0x149   :  { %v224_v42 = vpop.f32.mrf.mxu0 }
 0x14b   :  { %v735_v43 = vpop.f32.mrf.mxu0 }
 0x14d   :  { %v234_v44 = vpop.f32.mrf.mxu0 }
 0x14f   :  { %v738_v45 = vpop.f32.mrf.mxu0 }
 0x151   :  { %v244_v46 = vpop.f32.mrf.mxu0 }
 0x153   :  { %v741_v47 = vpop.f32.mrf.mxu0 }
 0x155   :  { %v254_v48 = vpop.f32.mrf.mxu0 }
 0x157   :  { %v744_v49 = vpop.f32.mrf.mxu0 }
 0x159   :  { %v264_v50 = vpop.f32.mrf.mxu0 }
 0x15b   :  { %v747_v51 = vpop.f32.mrf.mxu0 }
 0x15d   :  { %v274_v52 = vpop.f32.mrf.mxu0 }
 0x15f   :  { %v750_v54 = vpop.f32.mrf.mxu0 }
 0x160   :  { %751 = vmatprep.subr.mxu1 %v750_v54 }
 0x161   :  { %v284_v53 = vpop.f32.mrf.mxu0  ;;  %752 = vmatpush3.msra.mxu1 %v750_v54 }
 0x162   :  { %753 = vmatprep.subr.mxu1 %v284_v53 }
 0x163   :  { %754 = vmatpush3.msra.mxu1 %v284_v53 }
 0x164   :  { %755 = vmatprep.subr.mxu1 %v747_v51 }
 0x165   :  { %756 = vmatpush3.msra.mxu1 %v747_v51 }
 0x166   :  { %757 = vmatprep.subr.mxu1 %v274_v52 }
 0x167   :  { %758 = vmatpush3.msra.mxu1 %v274_v52 }
 0x168   :  { %759 = vmatprep.subr.mxu1 %v744_v49 }
 0x169   :  { %760 = vmatpush3.msra.mxu1 %v744_v49 }
 0x16a   :  { %761 = vmatprep.subr.mxu1 %v264_v50 }
 0x16b   :  { %762 = vmatpush3.msra.mxu1 %v264_v50 }
 0x16c   :  { %763 = vmatprep.subr.mxu1 %v741_v47 }
 0x16d   :  { %764 = vmatpush3.msra.mxu1 %v741_v47 }
 0x16e   :  { %765 = vmatprep.subr.mxu1 %v254_v48 }
 0x16f   :  { %766 = vmatpush3.msra.mxu1 %v254_v48 }
 0x170   :  { %767 = vmatprep.subr.mxu1 %v738_v45 }
 0x171   :  { %768 = vmatpush3.msra.mxu1 %v738_v45 }
 0x172   :  { %769 = vmatprep.subr.mxu1 %v244_v46 }
 0x173   :  { %770 = vmatpush3.msra.mxu1 %v244_v46 }
 0x174   :  { %771 = vmatprep.subr.mxu1 %v735_v43 }
 0x175   :  { %772 = vmatpush3.msra.mxu1 %v735_v43 }
 0x176   :  { %773 = vmatprep.subr.mxu1 %v234_v44 }
 0x177   :  { %774 = vmatpush3.msra.mxu1 %v234_v44 }
 0x178   :  { %775 = vmatprep.subr.mxu1 %v732_v41 }
 0x179   :  { %776 = vmatpush3.msra.mxu1 %v732_v41 }
 0x17a   :  { %777 = vmatprep.subr.mxu1 %v224_v42 }
 0x17b   :  { %778 = vmatpush3.msra.mxu1 %v224_v42 }
 0x17c   :  { %779 = vmatprep.subr.mxu1 %v729_v39 }
 0x17d   :  { %780 = vmatpush3.msra.mxu1 %v729_v39 }
 0x17e   :  { %781 = vmatprep.subr.mxu1 %v214_v40 }
 0x17f   :  { %782 = vmatpush3.msra.mxu1 %v214_v40 }
 0x180   :  { %784 = vmatmul.mubr.f32.vlgmr.msra.gmra.mxu1 %v974_v61 }
 0x181   :  { %786 = vmatprep.mubr.f32.mxu1 %v978_v0 }
 0x184   :  { %787 = vmatmul.mubr.f32.gmra.mxu1 %v980_v3 }
 0x185   :  { %789 = vmatprep.mubr.f32.mxu1 %v984_v6 }
 0x188   :  { %790 = vmatmul.mubr.f32.gmra.mxu1 %v986_v9 }
 0x189   :  { %792 = vmatprep.mubr.f32.mxu1 %v990_v12 }
 0x18c   :  { %793 = vmatmul.mubr.f32.gmra.mxu1 %v992_v15 }
 0x18d   :  { %795 = vmatprep.mubr.f32.mxu1 %v996_v18 }
 0x190   :  { %796 = vmatmul.mubr.f32.gmra.mxu1 %v998_v21 }
 0x191   :  { %798 = vmatprep.mubr.f32.mxu1 %v1002_v24 }
 0x194   :  { %799 = vmatmul.mubr.f32.gmra.mxu1 %v1004_v27 }
 0x195   :  { %801 = vmatprep.mubr.f32.mxu1 %v1008_v30 }
 0x198   :  { %802 = vmatmul.mubr.f32.gmra.mxu1 %v1010_v33 }
 0x199   :  { %804 = vmatprep.mubr.f32.mxu1 %v1014_v36 }
 0x19c   :  { %805 = vmatmul.mubr.f32.gmra.mxu1 %v403_v38 }
 0x240   :  { %v785_v55 = vpop.f32.mrf.mxu1 }
 0x241   :  { %550 = vst [vmem:[#allocation2 + $0x8] sm:$0xff] %v785_v55 }
 0x242   :  { %v470_v56 = vpop.f32.mrf.mxu1 }
 0x243   :  { %549 = vst [vmem:[#allocation2] sm:$0xff] %v470_v56 }
 0x244   :  { %v788_v57 = vpop.f32.mrf.mxu1 }
 0x245   :  { %552 = vst [vmem:[#allocation2 + $0x18] sm:$0xff] %v788_v57 }
 0x246   :  { %v480_v58 = vpop.f32.mrf.mxu1 }
 0x247   :  { %551 = vst [vmem:[#allocation2 + $0x10] sm:$0xff] %v480_v58 }
 0x248   :  { %v791_v59 = vpop.f32.mrf.mxu1 }
 0x249   :  { %554 = vst [vmem:[#allocation2 + $0x28] sm:$0xff] %v791_v59 }
 0x24a   :  { %v490_v60 = vpop.f32.mrf.mxu1 }
 0x24b   :  { %553 = vst [vmem:[#allocation2 + $0x20] sm:$0xff] %v490_v60 }
 0x24c   :  { %v794_v61 = vpop.f32.mrf.mxu1 }
 0x24d   :  { %556 = vst [vmem:[#allocation2 + $0x38] sm:$0xff] %v794_v61 }
 0x24e   :  { %v500_v62 = vpop.f32.mrf.mxu1 }
 0x24f   :  { %555 = vst [vmem:[#allocation2 + $0x30] sm:$0xff] %v500_v62 }
 0x250   :  { %v797_v63 = vpop.f32.mrf.mxu1 }
 0x251   :  { %558 = vst [vmem:[#allocation2 + $0x48] sm:$0xff] %v797_v63 }
 0x252   :  { %v510_v0 = vpop.f32.mrf.mxu1 }
 0x253   :  { %557 = vst [vmem:[#allocation2 + $0x40] sm:$0xff] %v510_v0 }
 0x254   :  { %v800_v1 = vpop.f32.mrf.mxu1 }
 0x255   :  { %560 = vst [vmem:[#allocation2 + $0x58] sm:$0xff] %v800_v1 }
 0x256   :  { %v520_v2 = vpop.f32.mrf.mxu1 }
 0x257   :  { %559 = vst [vmem:[#allocation2 + $0x50] sm:$0xff] %v520_v2 }
 0x258   :  { %v803_v3 = vpop.f32.mrf.mxu1 }
 0x259   :  { %562 = vst [vmem:[#allocation2 + $0x68] sm:$0xff] %v803_v3 }
 0x25a   :  { %v530_v4 = vpop.f32.mrf.mxu1 }
 0x25b   :  { %561 = vst [vmem:[#allocation2 + $0x60] sm:$0xff] %v530_v4 }
 0x25c   :  { %v806_v5 = vpop.f32.mrf.mxu1 }
 0x25d   :  { %564 = vst [vmem:[#allocation2 + $0x78] sm:$0xff] %v806_v5 }
 0x25e   :  { %v540_v6 = vpop.f32.mrf.mxu1 }
 0x25f   :  { %563 = vst [vmem:[#allocation2 + $0x70] sm:$0xff] %v540_v6 }
 0x260   :  { %826 = shalt.err (!%p823_p4)
}
 0x261   :  { %s841_s30 = smov 128   ;;  %s842_s5 = smov 8  }
 0x262   :  { %576 = dma.vmem_to_hbm [thread:$0]  %s571_s1, 2048, %s1037_s4, [#allocation3], %s841_s30, %s841_s30, %s842_s5  }
 0x263   :  { %835 = dma.done.wait [#allocation3], 2048  }
 0x264   :  { %836 = vsyncadd [#allocation3], 4294965248 }
 0x265   :  { %580 = vsyncpa [#allocation3], 1 }

</bundles_post_ra>
